<compile_context>
chip_gen: v5e
topology: v5e:2x2
jax: 0.10.0
libtpu: 0.0.40
codegen_flags: <defaults>
</compile_context>

<pallas_src>
import jax
import jax.numpy as jnp
from jax.experimental import pallas as pl
from jax.experimental.pallas import tpu as pltpu


_LANE = 128            # TPU lane width (last-dim tiling unit)
_MAX_TILE_B = 131072   # lanes per grid step; (F,tb)+(1,tb) f32, double-buffered
                       # -> ~5 MiB VMEM, safe on v5e/v6e/v7x scoped defaults.
_MIN_SPLIT_TILE = 8192 # only split into >=2 grid steps (v7x megacore) when each
                       # half-tile still amortizes the per-step overhead.
_MIN_PALLAS_BATCH = 4096  # below this, one fused XLA op beats 3 dispatches.


def _poly_linear_kernel(w_ref, xt_ref, o_ref):
    """o[0, b] = sum_j w[j] * x[j, b]   (pure VPU multiply-accumulate).

    w_ref : SMEM (F,)    -- scalar-prefetched nn.Linear weight row (f32)
    xt_ref: VMEM (F, TB) -- x transposed so batch rides the lane axis
    o_ref : VMEM (1, TB) -- lane-dense output slab
    """
    F = xt_ref.shape[0]
    # Unrolled scalar * vector FMA chain: no MXU fill/drain, no XLU reduce,
    # no masked width-1 stores.  F is static and tiny.
    acc = xt_ref[0:1, :] * w_ref[0]
    for j in range(1, F):
        acc = acc + xt_ref[j : j + 1, :] * w_ref[j]
    o_ref[...] = acc


def polynomial_regression_forward(x, weight, *, min_pallas_batch=_MIN_PALLAS_BATCH):
    """x: (B, F) f32; weight: (1, F) f32 (PyTorch nn.Linear layout, no bias).
    Returns (B, 1) f32, matching nn.Linear(F, 1, bias=False)(x)."""
    B, F = x.shape
    assert weight.shape == (1, F)

    if B < min_pallas_batch:
        # Dispatch-overhead regime: a single fused XLA op is strictly faster
        # than transpose + pallas_call + reshape.
        return jnp.sum(x * weight[0], axis=1, keepdims=True)

    # Layout plumbing: batch -> lane axis so the kernel streams lane-dense slabs.
    # TODO(synk): if the upstream polynomial-feature producer can emit x
    # feature-major (F, B), feed it here directly and skip this HBM pass.
    xt = x.T                                              # (F, B)

    # Batch (lane) tile: as big as possible, but keep >=2 grid steps for large
    # B so v7x's two TensorCores both engage (no-op on single-TC v5e/v6e).
    bl = pl.cdiv(B, _LANE) * _LANE
    tb = min(_MAX_TILE_B, bl)
    half = pl.cdiv(pl.cdiv(bl, 2), _LANE) * _LANE
    if half >= _MIN_SPLIT_TILE:
        tb = min(tb, half)
    grid = pl.cdiv(B, tb)   # non-divisible B handled by Pallas partial blocks

    itemsize = jnp.dtype(x.dtype).itemsize
    out = pl.pallas_call(
        _poly_linear_kernel,
        out_shape=jax.ShapeDtypeStruct((1, B), x.dtype),
        grid_spec=pltpu.PrefetchScalarGridSpec(
            # weight lives in SMEM as prefetched scalars: no VMEM stream,
            # no per-step DMA, no per-iteration broadcast.
            num_scalar_prefetch=1,
            grid=(grid,),
            in_specs=[pl.BlockSpec((F, tb), lambda i, w: (0, i))],
            out_specs=pl.BlockSpec((1, tb), lambda i, w: (0, i)),
        ),
        compiler_params=pltpu.CompilerParams(
            dimension_semantics=("parallel",),
        ),
        cost_estimate=pl.CostEstimate(
            flops=(2 * F - 1) * B,
            bytes_accessed=x.size * itemsize + B * itemsize + weight.size * itemsize,
            transcendentals=0,
        ),
    )(weight.reshape(-1), xt)

    # (1, B) -> (B, 1) is a pure reshape (same element order), no data movement.
    return out.reshape(B, 1)


if __name__ == "__main__":
    degree = 3                    # in_features = degree + 1 = 4
    in_features = degree + 1

    key = jax.random.PRNGKey(0)
    kx, kw, kx2 = jax.random.split(key, 3)

    # nn.Linear default init: U(-1/sqrt(in), 1/sqrt(in)), weight (1, degree+1), no bias.
    bound = 1.0 / jnp.sqrt(jnp.float32(in_features))
    weight = jax.random.uniform(
        kw, (1, in_features), dtype=jnp.float32, minval=-bound, maxval=bound
    )

    # Case 1: small batch, forced through the Pallas kernel (partial block, B < 128).
    x = jax.random.normal(kx, (8, in_features), dtype=jnp.float32)
    y = jax.block_until_ready(
        polynomial_regression_forward(x, weight, min_pallas_batch=0)
    )
    y_ref = x @ weight.T
    assert y.shape == (8, 1)
    assert jnp.allclose(y, y_ref, atol=1e-5, rtol=1e-5)

    # Case 2: batch not a multiple of 128, forced through the Pallas kernel
    # (exercises the un-padded trailing partial block path).
    x2 = jax.random.normal(kx2, (200, in_features), dtype=jnp.float32)
    y2 = jax.block_until_ready(
        polynomial_regression_forward(x2, weight, min_pallas_batch=0)
    )
    assert y2.shape == (200, 1)
    assert jnp.allclose(y2, x2 @ weight.T, atol=1e-5, rtol=1e-5)

    # Case 3: default path (tiny-batch short-circuit) matches as well.
    y3 = jax.block_until_ready(polynomial_regression_forward(x, weight))
    assert y3.shape == (8, 1)
    assert jnp.allclose(y3, y_ref, atol=1e-5, rtol=1e-5)

    print("KERNEL_OK")
</pallas_src>

<mosaic_0001>
module attributes {stable_mosaic.version = 11 : i64} {
  func.func @_poly_linear_kernel(%arg0: i32, %arg1: memref<4xf32, #tpu.memory_space<smem>>, %arg2: memref<4x128xf32, #tpu.memory_space<vmem>>, %arg3: memref<1x128xf32, #tpu.memory_space<vmem>>) attributes {dimension_semantics = [#tpu.dimension_semantics<parallel>], iteration_bounds = array<i64: 1>, scalar_prefetch = 1 : i64, scratch_operands = 0 : i64, tpu.core_type = #tpu.core_type<tc>, window_params = [{transform_indices = @transform_0, window_bounds = array<i64: 4, 128>}, {transform_indices = @transform_1, window_bounds = array<i64: 1, 128>}]} {
    %c0 = arith.constant 0 : index
    %c0_0 = arith.constant 0 : index
    %0 = vector.load %arg2[%c0, %c0_0] : memref<4x128xf32, #tpu.memory_space<vmem>>, vector<1x128xf32>
    %c0_1 = arith.constant 0 : index
    %1 = memref.load %arg1[%c0_1] : memref<4xf32, #tpu.memory_space<smem>>
    %2 = vector.broadcast %1 : f32 to vector<1x128xf32>
    %3 = arith.mulf %0, %2 : vector<1x128xf32>
    %c1 = arith.constant 1 : index
    %c0_2 = arith.constant 0 : index
    %4 = vector.load %arg2[%c1, %c0_2] : memref<4x128xf32, #tpu.memory_space<vmem>>, vector<1x128xf32>
    %c1_3 = arith.constant 1 : index
    %5 = memref.load %arg1[%c1_3] : memref<4xf32, #tpu.memory_space<smem>>
    %6 = vector.broadcast %5 : f32 to vector<1x128xf32>
    %7 = arith.mulf %4, %6 : vector<1x128xf32>
    %8 = arith.addf %3, %7 : vector<1x128xf32>
    %c2 = arith.constant 2 : index
    %c0_4 = arith.constant 0 : index
    %9 = vector.load %arg2[%c2, %c0_4] : memref<4x128xf32, #tpu.memory_space<vmem>>, vector<1x128xf32>
    %c2_5 = arith.constant 2 : index
    %10 = memref.load %arg1[%c2_5] : memref<4xf32, #tpu.memory_space<smem>>
    %11 = vector.broadcast %10 : f32 to vector<1x128xf32>
    %12 = arith.mulf %9, %11 : vector<1x128xf32>
    %13 = arith.addf %8, %12 : vector<1x128xf32>
    %c3 = arith.constant 3 : index
    %c0_6 = arith.constant 0 : index
    %14 = vector.load %arg2[%c3, %c0_6] : memref<4x128xf32, #tpu.memory_space<vmem>>, vector<1x128xf32>
    %c3_7 = arith.constant 3 : index
    %15 = memref.load %arg1[%c3_7] : memref<4xf32, #tpu.memory_space<smem>>
    %16 = vector.broadcast %15 : f32 to vector<1x128xf32>
    %17 = arith.mulf %14, %16 : vector<1x128xf32>
    %18 = arith.addf %13, %17 : vector<1x128xf32>
    %c0_8 = arith.constant 0 : index
    %c0_9 = arith.constant 0 : index
    %19 = vector.load %arg3[%c0_8, %c0_9] : memref<1x128xf32, #tpu.memory_space<vmem>>, vector<1x128xf32>
    tpu.vector_store %arg3[%c0_8, %c0_9], %18 {strides = array<i32>} : memref<1x128xf32, #tpu.memory_space<vmem>>, vector<1x128xf32>,
    return
  }
  func.func @transform_0(%arg0: i32, %arg1: memref<4xf32, #tpu.memory_space<smem>>) -> (i32, i32) {
    %c0_i32 = arith.constant 0 : i32
    %c0_i32_0 = arith.constant 0 : i32
    return %c0_i32, %arg0 : i32, i32
  }
  func.func @transform_1(%arg0: i32, %arg1: memref<4xf32, #tpu.memory_space<smem>>) -> (i32, i32) {
    %c0_i32 = arith.constant 0 : i32
    %c0_i32_0 = arith.constant 0 : i32
    return %c0_i32, %arg0 : i32, i32
  }
}

</mosaic_0001>

<bundles_post_ra>
// kernel: tpu_custom_call.1
= control target key start
LH: loop header
LB: loop body
LE: loop exit
PB: predicated region body
PF: predicated region fallthrough
CT: control target
= control target key end

     0   :  { %s141_s12 = smov [#allocation3]   ;;  %s168_s0 = inlined_call_operand.hbm [shape: f32[4], index: 0, kind: input, shape index: {}]   ;;  %s169_s1 = inlined_call_operand.hbm [shape: f32[4,8], index: 1, kind: input, shape index: {}]   ;;  %s170_s2 = inlined_call_operand.hbm [shape: f32[1,8], index: 2, kind: output, shape index: {}]  }
   0x1   :  { %s8_s11 = sshll.u32 %s168_s0, 4  ;;  %s9_s11 = int_to_ptr.hbm [resolvable:$true] %s8_s11 }
   0x2   :  { %11 = dma.hbm_to_smem %s9_s11, 16, %s141_s12, [#allocation2] }
   0x3   :  { %135 = dma.done.wait [#allocation2], 16 }
   0x4   :  { %136 = vsyncadd [#allocation2], 4294967280 }
   0x5   :  { %14 = sfence }
   0x6   :  { %15 = vsyncpa [#allocation5], 0 }
   0x7   :  { %16 = vsyncpa [#allocation6], 0  ;;  %s22_s15 = sshll.u32 %s169_s1, 4  ;;  %s142_s16 = smov [#allocation4]   ;;  %s23_s15 = int_to_ptr.hbm [resolvable:$true] %s22_s15 }
   0x8   :  { %s24_s17 = sshll.u32 %s142_s16, 4  ;;  %s25_s17 = int_to_ptr.vmem [resolvable:$true] %s24_s17 }
   0x9   :  { %27 = dma.hbm_to_vmem [thread:$0]  %s23_s15, 64, %s25_s17, [#allocation5]  }
   0xa   :  { %137 = dma.done.wait [#allocation5], 64  }
   0xb   :  { %138 = vsyncadd [#allocation5], 4294967232  ;;  %s33_s0 = sld [smem:[#allocation3]]  ;;  %v32_v0 = vld [vmem:[#allocation4] sm:$0x1]  ;;  %s143_s1 = smov [#allocation7]  }
   0xc   :  { %s69_s18 = sld [smem:[#allocation3 + $0x1]]  ;;  %v36_v2 = vld [vmem:[#allocation4 + $0x1] sm:$0x1]  ;;  %v41_v3 = vld [vmem:[#allocation4 + $0x2] sm:$0x1]  ;;  %s57_s21 = sshll.u32 %s143_s1, 4  ;;  %s58_s21 = int_to_ptr.vmem [resolvable:$true] %s57_s21 }
   0xd   :  { %s70_s19 = sld [smem:[#allocation3 + $0x2]]  ;;  %v46_v6 = vld [vmem:[#allocation4 + $0x3] sm:$0x1]  ;;  %s59_s24 = sshll.u32 %s170_s2, 4  ;;  %s60_s24 = int_to_ptr.hbm [resolvable:$true] %s59_s24 }
   0xe   :  { %s71_s20 = sld [smem:[#allocation3 + $0x3]] }
  0x11   :  { %v34_v1 = vstv %s33_s0 }
  0x12   :  { %v35_v4 = vmul.f32 %v34_v1, %v32_v0  ;;  %v38_v5 = vstv %s69_s18 }
  0x13   :  { %v39_v7 = vmul.f32 %v38_v5, %v36_v2  ;;  %v43_v8 = vstv %s70_s19 }
  0x14   :  { %v44_v9 = vmul.f32 %v43_v8, %v41_v3  ;;  %v48_v10 = vstv %s71_s20 }
  0x15   :  { %v40_v11 = vadd.f32 %v39_v7, %v35_v4  ;;  %v49_v12 = vmul.f32 %v48_v10, %v46_v6 }
  0x17   :  { %v45_v13 = vadd.f32 %v44_v9, %v40_v11 }
  0x19   :  { %v50_v14 = vadd.f32 %v49_v12, %v45_v13 }
  0x1b   :  { %51 = vst [vmem:[#allocation7] sm:$0x1] %v50_v14 }
  0x1c   :  { %62 = dma.vmem_to_hbm [thread:$0]  %s58_s21, 16, %s60_s24, [#allocation6]  }
  0x1d   :  { %139 = dma.done.wait [#allocation6], 16  }
  0x1e   :  { %140 = vsyncadd [#allocation6], 4294967280 }
  0x1f   :  { %67 = vsyncpa [#allocation5], 1 }
  0x20   :  { %68 = vsyncpa [#allocation6], 1 }

</bundles_post_ra>
